<compile_context>
chip_gen: v7x
topology: tpu7x:2x2x1
jax: 0.10.0
libtpu: 0.0.40
codegen_flags: <defaults>
</compile_context>

<pallas_src>
import functools

import jax
import jax.numpy as jnp
from jax.experimental import pallas as pl
from jax.experimental.pallas import tpu as pltpu

_LANES = 128
_SUBLANES = 8


def _round_up(n, m):
    return ((n + m - 1) // m) * m


def _linear_kernel(w_ref, b_ref, x_ref, o_ref):
    # w_ref, b_ref: (1, 1) scalars in SMEM; x_ref / o_ref: (TM, 128) in VMEM.
    # For nn.Linear(1, 1), x @ W^T + b is exactly an elementwise x * w + b.
    w = w_ref[0, 0]
    b = b_ref[0, 0]
    o_ref[...] = x_ref[...] * w + b


@functools.partial(jax.jit, static_argnames=("block_rows",))
def _forward_pallas(x, weight, bias, *, block_rows=2048):
    """Lane-dense, batch-tiled Pallas path.  x: (batch, 1) float32."""
    batch = x.shape[0]

    # Minimal padding: only up to the next 8x128 tile boundary.
    rows_padded = _round_up(pl.cdiv(batch, _LANES), _SUBLANES)
    padded = rows_padded * _LANES

    # Tile rows: multiple of 8 (sublane constraint), clamped so the
    # double-buffered in+out VMEM footprint stays well under budget (v7x: 64 MiB).
    block_rows = max(_SUBLANES, _round_up(int(block_rows), _SUBLANES))
    tm = min(block_rows, rows_padded, 16384)

    x_flat = x.reshape(-1).astype(jnp.float32)
    if padded != batch:
        x_flat = jnp.pad(x_flat, (0, padded - batch))
    x2d = x_flat.reshape(rows_padded, _LANES)

    w2d = weight.reshape(1, 1).astype(jnp.float32)
    b2d = bias.reshape(1, 1).astype(jnp.float32)

    # Partial last block (if rows_padded % tm != 0) is handled by Pallas.
    grid = (pl.cdiv(rows_padded, tm),)

    # Double-buffered input + output tiles, plus headroom.
    vmem_bytes = 4 * tm * _LANES * 4 + (4 << 20)

    out2d = pl.pallas_call(
        _linear_kernel,
        out_shape=jax.ShapeDtypeStruct((rows_padded, _LANES), jnp.float32),
        grid_spec=pl.GridSpec(
            grid=grid,
            in_specs=[
                pl.BlockSpec(memory_space=pltpu.MemorySpace.SMEM),   # weight scalar
                pl.BlockSpec(memory_space=pltpu.MemorySpace.SMEM),   # bias scalar
                pl.BlockSpec((tm, _LANES), lambda i: (i, 0)),        # x tile
            ],
            out_specs=pl.BlockSpec((tm, _LANES), lambda i: (i, 0)),
        ),
        compiler_params=pltpu.CompilerParams(
            dimension_semantics=("parallel",),
            vmem_limit_bytes=max(vmem_bytes, 32 << 20),
        ),
    )(w2d, b2d, x2d)

    # Back to (batch, 1); drop padded tail (fuses under the enclosing jit).
    return out2d.reshape(padded, 1)[:batch]


@jax.jit
def _forward_xla(x, weight, bias):
    # Small-batch fast path: single fused elementwise op, no kernel launch.
    w = weight.reshape(()).astype(jnp.float32)
    b = bias.reshape(()).astype(jnp.float32)
    return x.astype(jnp.float32) * w + b


def _default_block_rows():
    try:
        kind = jax.devices()[0].device_kind.lower()
    except Exception:
        return 2048
    if "v7" in kind:
        return 8192   # 4 MiB/block; 16 MiB double-buffered -> fits 64 MiB VMEM
    return 2048       # 1 MiB/block on v5e/v6e


def stock_predictor_forward(x, weight, bias, *, force_pallas=False,
                            min_pallas_batch=4096, block_rows=None):
    """y = x @ weight.T + bias with weight (1,1), bias (1,), x (batch, 1)."""
    batch = x.shape[0]
    if not force_pallas and batch < min_pallas_batch:
        return _forward_xla(x, weight, bias)
    if block_rows is None:
        block_rows = _default_block_rows()
    return _forward_pallas(x, weight, bias, block_rows=block_rows)


if __name__ == "__main__":
    key = jax.random.PRNGKey(0)
    kx, kw, kb, kx2, kx3 = jax.random.split(key, 5)

    # nn.Linear(1, 1)-style init: U(-1/sqrt(fan_in), 1/sqrt(fan_in)), fan_in=1.
    weight = jax.random.uniform(kw, (1, 1), jnp.float32, minval=-1.0, maxval=1.0)
    bias = jax.random.uniform(kb, (1,), jnp.float32, minval=-1.0, maxval=1.0)

    # Case 1: batch not a multiple of 128 (exercises minimal pad + slice),
    # forced through the Pallas kernel with the device-default tile.
    x1 = jax.random.normal(kx, (2000, 1), jnp.float32)
    y1 = jax.block_until_ready(
        stock_predictor_forward(x1, weight, bias, force_pallas=True))
    ref1 = x1 @ weight.T + bias
    assert y1.shape == (2000, 1)
    assert jnp.allclose(y1, ref1, atol=1e-6)

    # Case 2: multi-step grid (grid=(2,)) with a small block size.
    x2 = jax.random.normal(kx2, (2048, 1), jnp.float32)
    y2 = jax.block_until_ready(
        stock_predictor_forward(x2, weight, bias, force_pallas=True,
                                block_rows=8))
    ref2 = x2 @ weight.T + bias
    assert y2.shape == (2048, 1)
    assert jnp.allclose(y2, ref2, atol=1e-6)

    # Case 3: partial last block (24 rows, tm=16 -> grid=(2,), second block
    # only half-covered) to exercise Pallas' own tail handling.
    x3 = jax.random.normal(kx3, (3072, 1), jnp.float32)
    y3 = jax.block_until_ready(
        stock_predictor_forward(x3, weight, bias, force_pallas=True,
                                block_rows=16))
    ref3 = x3 @ weight.T + bias
    assert y3.shape == (3072, 1)
    assert jnp.allclose(y3, ref3, atol=1e-6)

    # Case 4: tiny batch takes the plain fused-XLA fast path (dispatch check).
    x4 = jax.random.normal(kx, (8, 1), jnp.float32)
    y4 = jax.block_until_ready(stock_predictor_forward(x4, weight, bias))
    ref4 = x4 @ weight.T + bias
    assert jnp.allclose(y4, ref4, atol=1e-6)

    print("KERNEL_OK")
</pallas_src>

<mosaic_0001>
module attributes {stable_mosaic.version = 11 : i64} {
  func.func @_linear_kernel(%arg0: i32, %arg1: memref<1x1xf32, #tpu.memory_space<smem>>, %arg2: memref<1x1xf32, #tpu.memory_space<smem>>, %arg3: memref<16x128xf32, #tpu.memory_space<vmem>>, %arg4: memref<16x128xf32, #tpu.memory_space<vmem>>) attributes {dimension_semantics = [#tpu.dimension_semantics<parallel>], iteration_bounds = array<i64: 1>, scalar_prefetch = 0 : i64, scratch_operands = 0 : i64, tpu.core_type = #tpu.core_type<tc>, window_params = [{transform_indices = @transform_0, window_bounds = array<i64: 1, 1>}, {transform_indices = @transform_1, window_bounds = array<i64: 1, 1>}, {transform_indices = @transform_2, window_bounds = array<i64: 16, 128>}, {transform_indices = @transform_3, window_bounds = array<i64: 16, 128>}]} {
    %c0 = arith.constant 0 : index
    %c0_0 = arith.constant 0 : index
    %0 = memref.load %arg1[%c0, %c0_0] : memref<1x1xf32, #tpu.memory_space<smem>>
    %c0_1 = arith.constant 0 : index
    %c0_2 = arith.constant 0 : index
    %1 = memref.load %arg2[%c0_1, %c0_2] : memref<1x1xf32, #tpu.memory_space<smem>>
    %c0_3 = arith.constant 0 : index
    %c0_4 = arith.constant 0 : index
    %2 = vector.load %arg3[%c0_3, %c0_4] : memref<16x128xf32, #tpu.memory_space<vmem>>, vector<16x128xf32>
    %3 = vector.broadcast %0 : f32 to vector<16x128xf32>
    %4 = arith.mulf %2, %3 : vector<16x128xf32>
    %5 = vector.broadcast %1 : f32 to vector<16x128xf32>
    %6 = arith.addf %4, %5 : vector<16x128xf32>
    %c0_5 = arith.constant 0 : index
    %c0_6 = arith.constant 0 : index
    %7 = vector.load %arg4[%c0_5, %c0_6] : memref<16x128xf32, #tpu.memory_space<vmem>>, vector<16x128xf32>
    tpu.vector_store %arg4[%c0_5, %c0_6], %6 {strides = array<i32>} : memref<16x128xf32, #tpu.memory_space<vmem>>, vector<16x128xf32>,
    return
  }
  func.func @transform_0(%arg0: i32) -> (i32, i32) {
    %c0_i32 = arith.constant 0 : i32
    %c0_i32_0 = arith.constant 0 : i32
    %c0_i32_1 = arith.constant 0 : i32
    return %c0_i32, %c0_i32_0 : i32, i32
  }
  func.func @transform_1(%arg0: i32) -> (i32, i32) {
    %c0_i32 = arith.constant 0 : i32
    %c0_i32_0 = arith.constant 0 : i32
    %c0_i32_1 = arith.constant 0 : i32
    return %c0_i32, %c0_i32_0 : i32, i32
  }
  func.func @transform_2(%arg0: i32) -> (i32, i32) {
    %c0_i32 = arith.constant 0 : i32
    %c0_i32_0 = arith.constant 0 : i32
    return %arg0, %c0_i32 : i32, i32
  }
  func.func @transform_3(%arg0: i32) -> (i32, i32) {
    %c0_i32 = arith.constant 0 : i32
    %c0_i32_0 = arith.constant 0 : i32
    return %arg0, %c0_i32 : i32, i32
  }
}

</mosaic_0001>

<bundles_post_ra>
// kernel: _forward_pallas.1
= control target key start
LH: loop header
LB: loop body
LE: loop exit
PB: predicated region body
PF: predicated region fallthrough
CT: control target
= control target key end

     0   :  { %s119_s0 = inlined_call_operand.<no memory space> [shape: f32[1,1], index: 0, kind: input, shape index: {}]   ;;  %s120_s1 = inlined_call_operand.<no memory space> [shape: f32[1,1], index: 1, kind: input, shape index: {}]   ;;  %s121_s2 = inlined_call_operand.vmem [shape: f32[16,128], index: 2, kind: input, shape index: {}]   ;;  %s122_s3 = inlined_call_operand.hbm [shape: f32[16,128], index: 3, kind: output, shape index: {}]  }
   0x1   :  { %v19_v0 = vld [vmem:[%s121_s2] sm:$0xff]  ;;  %v21_v1 = vstv %s119_s0  ;;  %v24_v2 = vstv %s120_s1  ;;  %v20_v3 = vld [vmem:[%s121_s2 + $0x8] sm:$0xff] }
   0x2   :  { %v22_v4 = vmul.f32 %v21_v1, %v19_v0  ;;  %v23_v5 = vmul.f32 %v21_v1, %v20_v3 }
   0x3   :  { %10 = vsyncpa [#allocation5], 0  ;;  %s72_s20 = smov [#allocation4]  }
   0x4   :  { %s34_s21 = sshll.u32 %s72_s20, 4  ;;  %v25_v6 = vadd.f32 %v24_v2, %v22_v4  ;;  %v26_v7 = vadd.f32 %v24_v2, %v23_v5  ;;  %s35_s21 = int_to_ptr.vmem [resolvable:$true] %s34_s21 }
   0x5   :  { %s48_s22 = scalar_lea.vmem %s35_s21, 256  ;;  %p53_p1 = scmp.lt.s32.totalorder %s35_s21, %s35_s21 }
   0x6   :  { %27 = vst [vmem:[#allocation4] sm:$0xff] %v25_v6  ;;  %28 = vst [vmem:[#allocation4 + $0x8] sm:$0xff] %v26_v7  ;;  %p49_p0 = scmp.ne.s32.totalorder %s35_s21, %s48_s22  ;;  %p54_p2 = scmp.lt.s32.totalorder %s48_s22, %s48_s22 }
   0x8   :  { %p55_p3 = por %p54_p2, %p53_p1 }
   0xa   :  { %p56_p4 = pnand %p55_p3, %p49_p0 }
   0xc   :  { %59 = shalt.err (!%p56_p4)
}
   0xd   :  { %s60_s2 = scalar_lea.hbm %s122_s3, 256 }
   0xe   :  { %p61_p5 = scmp.ne.s32.totalorder %s122_s3, %s60_s2  ;;  %p64_p6 = scmp.lt.u32.totalorder %s60_s2, %s122_s3 }
  0x10   :  { %p66_p7 = pnand %p64_p6, %p61_p5 }
  0x12   :  { %69 = shalt.err (!%p66_p7)
}
  0x13   :  { %s73_s27 = smov 128   ;;  %s74_s28 = smov 8  }
  0x14   :  { %40 = dma.vmem_to_hbm [thread:$0]  %s35_s21, 256, %s122_s3, [#allocation5], %s73_s27, %s73_s27, %s74_s28  }
  0x15   :  { %70 = dma.done.wait [#allocation5], 256  }
  0x16   :  { %71 = vsyncadd [#allocation5], 4294967040 }
  0x17   :  { %44 = vsyncpa [#allocation5], 1 }

</bundles_post_ra>
